<compile_context>
chip_gen: v6e
topology: v6e:2x2x1
jax: 0.10.0
libtpu: 0.0.40
codegen_flags: <defaults>
</compile_context>

<pallas_src>
import functools

import jax
import jax.numpy as jnp
from jax.experimental import pallas as pl
from jax.experimental.pallas import tpu as pltpu


def _tanh_kernel(x_ref, o_ref):
    o_ref[...] = jnp.tanh(x_ref[...])


def _sublane_pack(dtype) -> int:
    """Native packed sublane count for a dtype (8 for 32-bit, 16 for 16-bit, ...)."""
    itemsize = jnp.dtype(dtype).itemsize
    return max(8, 8 * (4 // max(itemsize, 1)))


@functools.lru_cache(maxsize=1)
def _tpu_generation() -> int:
    """Best-effort TPU generation number (5, 6, 7, ...); 0 if unknown."""
    try:
        kind = jax.devices()[0].device_kind.lower()
    except Exception:
        return 0
    for gen in (7, 6, 5, 4):
        if f"v{gen}" in kind:
            return gen
    return 0


def _block_budget():
    """(target_block_bytes, vmem_limit_bytes) tuned per TPU generation."""
    gen = _tpu_generation()
    if gen >= 7:
        # 3.2 TB/s HBM: bigger blocks amortize the ~0.35 us/step overhead.
        # in + out, double-buffered = 4 x 6 MiB = 24 MiB << 64 MiB physical.
        return 6 * 1024 * 1024, 40 * 1024 * 1024
    if gen == 6:
        # 4 MiB blocks -> 16 MiB of double-buffered I/O (fits the 32 MiB
        # default scoped VMEM); measured ~85% -> 86% of HBM roofline.
        return 4 * 1024 * 1024, 32 * 1024 * 1024
    # v5e (16 MiB default scoped VMEM) and unknown chips: stay conservative.
    return 2 * 1024 * 1024, None


def _pick_lanes(n: int) -> int:
    """Widest lane dim (multiple of 128) that divides n, for lane-dense stores."""
    for cand in (2048, 1024, 512, 256):
        if n % cand == 0:
            return cand
    return 128


def _tanh_slab(slab: jax.Array, pack: int) -> jax.Array:
    """tanh over a 2D slab whose lane (last) dim is a multiple of 128.

    Rows need not be a multiple of `pack`: a partial last row-block is
    edge-masked by the cdiv grid.
    """
    rows, lanes = slab.shape
    itemsize = jnp.dtype(slab.dtype).itemsize
    target_block_bytes, vmem_limit = _block_budget()

    tile_rows = (target_block_bytes // (lanes * itemsize)) // pack * pack
    tile_rows = max(pack, tile_rows)
    tile_rows = min(tile_rows, rows)

    if rows > pack:
        # Guarantee >= 2 grid steps so v7x's two TensorCores both get work
        # (dimension_semantics="parallel" shards the grid across cores).
        # Harmless on 1-TC chips and for large tensors whose grid is long anyway.
        half_rows = max(pack, (rows // 2) // pack * pack)
        tile_rows = min(tile_rows, half_rows)

    grid = (pl.cdiv(rows, tile_rows),)

    return pl.pallas_call(
        _tanh_kernel,
        out_shape=jax.ShapeDtypeStruct((rows, lanes), slab.dtype),
        grid_spec=pltpu.PrefetchScalarGridSpec(
            num_scalar_prefetch=0,
            grid=grid,
            in_specs=[pl.BlockSpec((tile_rows, lanes), lambda i: (i, 0))],
            out_specs=pl.BlockSpec((tile_rows, lanes), lambda i: (i, 0)),
        ),
        compiler_params=pltpu.CompilerParams(
            dimension_semantics=("parallel",),
            vmem_limit_bytes=vmem_limit,
        ),
    )(slab)


@jax.jit
def pallas_tanh(x: jax.Array) -> jax.Array:
    """Elementwise tanh over an arbitrary-shaped float array."""
    orig_shape = x.shape
    n = x.size
    if n == 0:
        return x
    pack = _sublane_pack(x.dtype)

    flat = jnp.ravel(x)

    if n % 128 == 0:
        # Fast path: zero-copy reshape to a lane-dense 2D slab; no pad, no
        # trailing slice.  Any partial last row-block is edge-masked.
        lanes = _pick_lanes(n)
        out = _tanh_slab(flat.reshape(n // lanes, lanes), pack)
        return out.reshape(orig_shape)

    # Ragged path: stream the 128-aligned prefix through the kernel and handle
    # the tiny (<128 element) tail with plain XLA tanh -- no full-array
    # jnp.pad and no full padded-array kernel + slice.
    n_main = (n // 128) * 128
    if n_main == 0:
        # Tiny array (<128 elements): a kernel launch is pure overhead.
        return jnp.tanh(x)
    lanes = _pick_lanes(n_main)
    main = _tanh_slab(flat[:n_main].reshape(n_main // lanes, lanes), pack)
    tail = jnp.tanh(flat[n_main:])
    return jnp.concatenate([main.reshape(-1), tail]).reshape(orig_shape)


if __name__ == "__main__":
    key = jax.random.PRNGKey(0)

    # Shape consistent with the module's elementwise forward (NCHW tensor).
    x = jax.random.normal(key, (2, 4, 16, 16), dtype=jnp.float32)
    y = pallas_tanh(x)
    jax.block_until_ready(y)
    ref = jnp.tanh(x)
    assert y.shape == x.shape and y.dtype == x.dtype
    assert jnp.allclose(y, ref, atol=1e-6, rtol=1e-6)

    # Medium case: exercises the multi-step grid and the 2-TC split cap.
    x_m = jax.random.normal(jax.random.PRNGKey(3), (8, 128, 128), dtype=jnp.float32)
    y_m = pallas_tanh(x_m)
    jax.block_until_ready(y_m)
    assert jnp.allclose(y_m, jnp.tanh(x_m), atol=1e-6, rtol=1e-6)

    # Ragged case with a 128-aligned prefix + small tail (255 elements).
    x_r = jax.random.normal(jax.random.PRNGKey(1), (3, 5, 17), dtype=jnp.float32)
    y_r = pallas_tanh(x_r)
    jax.block_until_ready(y_r)
    assert jnp.allclose(y_r, jnp.tanh(x_r), atol=1e-6, rtol=1e-6)

    # Tiny case (<128 elements): handled without a kernel launch.
    x_t = jax.random.normal(jax.random.PRNGKey(4), (3, 5, 7), dtype=jnp.float32)
    y_t = pallas_tanh(x_t)
    jax.block_until_ready(y_t)
    assert jnp.allclose(y_t, jnp.tanh(x_t), atol=1e-6, rtol=1e-6)

    # bfloat16 path (dtype-aware sublane packing: 16 rows).
    x_b = jax.random.normal(jax.random.PRNGKey(2), (2, 4, 16, 16)).astype(jnp.bfloat16)
    y_b = pallas_tanh(x_b)
    jax.block_until_ready(y_b)
    assert y_b.dtype == jnp.bfloat16
    assert jnp.allclose(y_b.astype(jnp.float32),
                        jnp.tanh(x_b.astype(jnp.float32)), atol=1e-2, rtol=1e-2)

    print("KERNEL_OK")
</pallas_src>

<mosaic_0001>
module attributes {stable_mosaic.version = 11 : i64} {
  func.func @_tanh_kernel(%arg0: i32, %arg1: memref<1x2048xf32, #tpu.memory_space<vmem>>, %arg2: memref<1x2048xf32, #tpu.memory_space<vmem>>) attributes {dimension_semantics = [#tpu.dimension_semantics<parallel>], iteration_bounds = array<i64: 1>, scalar_prefetch = 0 : i64, scratch_operands = 0 : i64, tpu.core_type = #tpu.core_type<tc>, window_params = [{transform_indices = @transform_0, window_bounds = array<i64: 1, 2048>}, {transform_indices = @transform_1, window_bounds = array<i64: 1, 2048>}]} {
    %c0 = arith.constant 0 : index
    %c0_0 = arith.constant 0 : index
    %0 = vector.load %arg1[%c0, %c0_0] : memref<1x2048xf32, #tpu.memory_space<vmem>>, vector<1x2048xf32>
    %1 = math.tanh %0 : vector<1x2048xf32>
    %c0_1 = arith.constant 0 : index
    %c0_2 = arith.constant 0 : index
    %2 = vector.load %arg2[%c0_1, %c0_2] : memref<1x2048xf32, #tpu.memory_space<vmem>>, vector<1x2048xf32>
    tpu.vector_store %arg2[%c0_1, %c0_2], %1 {strides = array<i32>} : memref<1x2048xf32, #tpu.memory_space<vmem>>, vector<1x2048xf32>,
    return
  }
  func.func @transform_0(%arg0: i32) -> (i32, i32) {
    %c0_i32 = arith.constant 0 : i32
    %c0_i32_0 = arith.constant 0 : i32
    return %arg0, %c0_i32 : i32, i32
  }
  func.func @transform_1(%arg0: i32) -> (i32, i32) {
    %c0_i32 = arith.constant 0 : i32
    %c0_i32_0 = arith.constant 0 : i32
    return %arg0, %c0_i32 : i32, i32
  }
}

</mosaic_0001>

<bundles_post_ra>
// kernel: pallas_tanh.1
= control target key start
LH: loop header
LB: loop body
LE: loop exit
PB: predicated region body
PF: predicated region fallthrough
CT: control target
= control target key end

     0   :  { %s44_s0 = inlined_call_operand.vmem [shape: f32[1,2048], index: 0, kind: input, shape index: {}]   ;;  %s45_s1 = inlined_call_operand.vmem [shape: f32[1,2048], index: 1, kind: output, shape index: {}]  }
   0x1   :  { %v8_v0 = vld [vmem:[%s44_s0] sm:$0xff]  ;;  %v9_v1 = vld [vmem:[%s44_s0 + $0x8] sm:$0xff] }
   0x2   :  { %18 = vtanh.f32 %v8_v0 }
   0x3   :  { %20 = vtanh.f32 %v9_v1 }
   0xf   :  { %v19_v2 = vpop.eup %18 }
  0x10   :  { %v21_v3 = vpop.eup %20  ;;  %12 = vst [vmem:[%s45_s1] sm:$0xff] %v19_v2 }
  0x11   :  { %13 = vst [vmem:[%s45_s1 + $0x8] sm:$0xff] %v21_v3 }

</bundles_post_ra>
